<compile_context>
chip_gen: v7x
topology: tpu7x:2x2x1
jax: 0.10.0
libtpu: 0.0.40
codegen_flags: <defaults>
</compile_context>

<pallas_src>
import jax
import jax.numpy as jnp
from jax.experimental import pallas as pl
from jax.experimental.pallas import tpu as pltpu


def dqn_kernel(vt_ref, w1_ref, b1_ref, w2_ref, b2_ref, w3_ref, b3_ref, ot_ref):
    vt = vt_ref[...]                       # (2, TB)  f32, batch along lanes
    w1 = w1_ref[...]                       # (16, 2)  f32

    # fc1 + ReLU on the VPU: K=2 -> two broadcast FMAs (outer products), full f32,
    # full-lane-width since the batch dim is the lane dim.
    h1 = w1[:, 0:1] * vt[0:1, :] + w1[:, 1:2] * vt[1:2, :] + b1_ref[...]
    h1 = jnp.maximum(h1, 0.0)              # (16, TB)

    # fc2 + ReLU on the MXU: f32 operands, f32 accumulation.
    h2 = jnp.dot(w2_ref[...], h1, preferred_element_type=jnp.float32)
    h2 = jnp.maximum(h2 + b2_ref[...], 0.0)           # (32, TB)

    # TODO(synk): Dropout(0.2) is identity in eval mode; training-mode PRNG masking
    # (pltpu.prng_seed / pltpu.prng_random_bits) intentionally not applied.

    # head: (O_pad, 32) @ (32, TB) -> (O_pad, TB). Output stays feature-major, so
    # the HBM store is lane-dense (TB multiple of 128) but only O_pad (=8) rows.
    out = jnp.dot(w3_ref[...], h2, preferred_element_type=jnp.float32)
    ot_ref[...] = (out + b3_ref[...]).astype(ot_ref.dtype)


def _round_up(n, m):
    return ((n + m - 1) // m) * m


def dqn_forward(x, v, params, *, max_tb=4096):
    """x: unused image tensor (API parity with DQNBase.forward). v: (B, 2) f32."""
    del x  # unused by DQNBase.forward, matching the PyTorch module exactly.
    w1, b1, w2, b2, w3, b3 = params        # PyTorch orientation: W (out,in), b (out,1)
    B = v.shape[0]
    outputs = w3.shape[0]

    LANES, SUBLANES = 128, 8

    # Batch tiling (batch lives on the lane axis): TB multiple of 128; a single
    # grid step up to max_tb rows, TB=max_tb tiles beyond that.
    B_pad = _round_up(B, LANES)
    if B_pad <= max_tb:
        TB = B_pad
    else:
        TB = max_tb
        B_pad = _round_up(B, TB)
    steps = B_pad // TB

    # Feature-major input: (2, B_pad). Tiny (8 B/row) wrapper-side transpose+pad.
    vt = jnp.pad(v.T, ((0, 0), (0, B_pad - B)))

    # Pad head rows to a sublane multiple (8) -> (8, TB) out block, still narrow.
    O_pad = _round_up(outputs, SUBLANES)
    w3p = jnp.pad(w3, ((0, O_pad - outputs), (0, 0)))
    b3p = jnp.pad(b3, ((0, O_pad - outputs), (0, 0)))

    # Weights/biases: full-array blocks with constant index_maps -> fetched once,
    # VMEM-resident across all grid steps.
    resident = lambda a: pl.BlockSpec(a.shape, lambda i: (0,) * a.ndim)

    # Megacore split only pays off with >=2 steps per core; otherwise keep the
    # grid on one core ("arbitrary") to avoid duplicated prologue/weight DMA.
    dims = ("parallel",) if steps >= 4 else ("arbitrary",)

    out_t = pl.pallas_call(
        dqn_kernel,
        out_shape=jax.ShapeDtypeStruct((O_pad, B_pad), jnp.float32),
        grid=(steps,),
        in_specs=[
            pl.BlockSpec((2, TB), lambda i: (0, i)),          # v^T tile (pipelined)
            resident(w1), resident(b1),
            resident(w2), resident(b2),
            resident(w3p), resident(b3p),
        ],
        out_specs=pl.BlockSpec((O_pad, TB), lambda i: (0, i)),
        compiler_params=pltpu.CompilerParams(dimension_semantics=dims),
    )(vt, w1, b1, w2, b2, w3p, b3p)

    # Back to PyTorch's (B, outputs); the slice/transpose is 8*B f32 -> negligible.
    return out_t[:outputs, :B].T


def init_params(key, outputs):
    """Deterministic init matching PyTorch nn.Linear shapes: W (out,in), b (out,1).
    Everything stays f32 (no bf16 casts)."""
    ks = jax.random.split(key, 6)

    def linear(kw, kb, fan_in, fan_out):
        bound = 1.0 / jnp.sqrt(fan_in)
        w = jax.random.uniform(kw, (fan_out, fan_in), jnp.float32, -bound, bound)
        b = jax.random.uniform(kb, (fan_out, 1), jnp.float32, -bound, bound)
        return w, b

    w1, b1 = linear(ks[0], ks[1], 2, 16)
    w2, b2 = linear(ks[2], ks[3], 16, 32)
    w3, b3 = linear(ks[4], ks[5], 32, outputs)
    return (w1, b1, w2, b2, w3, b3)


if __name__ == "__main__":
    key = jax.random.PRNGKey(0)
    k_x, k_v, k_p = jax.random.split(key, 3)

    batch, channels, height, width, outputs = 8, 4, 16, 16, 4

    # x is the (unused) NCHW observation tensor the module signature implies.
    x = jax.random.normal(k_x, (batch, channels, height, width), jnp.float32)
    # v is the 2-feature vector input actually consumed by the network.
    v = jax.random.normal(k_v, (batch, 2), jnp.float32)

    params = init_params(k_p, outputs)

    out = dqn_forward(x, v, params)
    jax.block_until_ready(out)

    # Pure-JAX f32 reference (eval-mode dropout == identity). HIGHEST precision =
    # true f32 ground truth; tolerance leaves headroom for any backend-default
    # bf16 rounding inside the matmuls.
    w1, b1, w2, b2, w3, b3 = params
    hp = jax.lax.Precision.HIGHEST
    h1 = jnp.maximum(jnp.dot(v, w1.T, precision=hp) + b1.T, 0.0)
    h2 = jnp.maximum(jnp.dot(h1, w2.T, precision=hp) + b2.T, 0.0)
    ref = jnp.dot(h2, w3.T, precision=hp) + b3.T

    assert out.shape == (batch, outputs)
    assert jnp.allclose(out, ref, atol=2e-2, rtol=2e-2)

    print("KERNEL_OK")
</pallas_src>

<mosaic_0001>
module attributes {stable_mosaic.version = 11 : i64} {
  func.func @dqn_kernel(%arg0: i32, %arg1: memref<2x128xf32, #tpu.memory_space<vmem>>, %arg2: memref<16x2xf32, #tpu.memory_space<vmem>>, %arg3: memref<16x1xf32, #tpu.memory_space<vmem>>, %arg4: memref<32x16xf32, #tpu.memory_space<vmem>>, %arg5: memref<32x1xf32, #tpu.memory_space<vmem>>, %arg6: memref<8x32xf32, #tpu.memory_space<vmem>>, %arg7: memref<8x1xf32, #tpu.memory_space<vmem>>, %arg8: memref<8x128xf32, #tpu.memory_space<vmem>>) attributes {dimension_semantics = [#tpu.dimension_semantics<arbitrary>], iteration_bounds = array<i64: 1>, scalar_prefetch = 0 : i64, scratch_operands = 0 : i64, tpu.core_type = #tpu.core_type<tc>, window_params = [{transform_indices = @transform_0, window_bounds = array<i64: 2, 128>}, {pipeline_mode = #tpu.pipeline_mode<synchronous>, transform_indices = @transform_1, window_bounds = array<i64: 16, 2>}, {pipeline_mode = #tpu.pipeline_mode<synchronous>, transform_indices = @transform_2, window_bounds = array<i64: 16, 1>}, {pipeline_mode = #tpu.pipeline_mode<synchronous>, transform_indices = @transform_3, window_bounds = array<i64: 32, 16>}, {pipeline_mode = #tpu.pipeline_mode<synchronous>, transform_indices = @transform_4, window_bounds = array<i64: 32, 1>}, {pipeline_mode = #tpu.pipeline_mode<synchronous>, transform_indices = @transform_5, window_bounds = array<i64: 8, 32>}, {pipeline_mode = #tpu.pipeline_mode<synchronous>, transform_indices = @transform_6, window_bounds = array<i64: 8, 1>}, {transform_indices = @transform_7, window_bounds = array<i64: 8, 128>}]} {
    %c0 = arith.constant 0 : index
    %c0_0 = arith.constant 0 : index
    %0 = vector.load %arg1[%c0, %c0_0] : memref<2x128xf32, #tpu.memory_space<vmem>>, vector<2x128xf32>
    %c0_1 = arith.constant 0 : index
    %c0_2 = arith.constant 0 : index
    %1 = vector.load %arg2[%c0_1, %c0_2] : memref<16x2xf32, #tpu.memory_space<vmem>>, vector<16x2xf32>
    %2 = vector.extract_strided_slice %1 {offsets = [0, 0], sizes = [16, 1], strides = [1, 1]} : vector<16x2xf32> to vector<16x1xf32>
    %3 = vector.extract_strided_slice %0 {offsets = [0, 0], sizes = [1, 128], strides = [1, 1]} : vector<2x128xf32> to vector<1x128xf32>
    %4 = vector.broadcast %2 : vector<16x1xf32> to vector<16x128xf32>
    %5 = vector.broadcast %3 : vector<1x128xf32> to vector<16x128xf32>
    %6 = arith.mulf %4, %5 : vector<16x128xf32>
    %7 = vector.extract_strided_slice %1 {offsets = [0, 1], sizes = [16, 1], strides = [1, 1]} : vector<16x2xf32> to vector<16x1xf32>
    %8 = vector.extract_strided_slice %0 {offsets = [1, 0], sizes = [1, 128], strides = [1, 1]} : vector<2x128xf32> to vector<1x128xf32>
    %9 = vector.broadcast %7 : vector<16x1xf32> to vector<16x128xf32>
    %10 = vector.broadcast %8 : vector<1x128xf32> to vector<16x128xf32>
    %11 = arith.mulf %9, %10 : vector<16x128xf32>
    %12 = arith.addf %6, %11 : vector<16x128xf32>
    %c0_3 = arith.constant 0 : index
    %c0_4 = arith.constant 0 : index
    %13 = vector.load %arg3[%c0_3, %c0_4] : memref<16x1xf32, #tpu.memory_space<vmem>>, vector<16x1xf32>
    %14 = vector.broadcast %13 : vector<16x1xf32> to vector<16x128xf32>
    %15 = arith.addf %12, %14 : vector<16x128xf32>
    %cst = arith.constant 0.000000e+00 : f32
    %16 = vector.broadcast %cst : f32 to vector<16x128xf32>
    %17 = arith.maximumf %15, %16 : vector<16x128xf32>
    %c0_5 = arith.constant 0 : index
    %c0_6 = arith.constant 0 : index
    %18 = vector.load %arg4[%c0_5, %c0_6] : memref<32x16xf32, #tpu.memory_space<vmem>>, vector<32x16xf32>
    %cst_7 = arith.constant dense<0.000000e+00> : vector<32x128xf32>
    %19 = tpu.matmul %18, %17, %cst_7 {dimension_numbers = #tpu.dot_dimension_numbers<[1], [0], [0], [1], [0, 0, 1, 1], [], []>} : vector<32x16xf32>, vector<16x128xf32>, vector<32x128xf32> -> vector<32x128xf32>
    %c0_8 = arith.constant 0 : index
    %c0_9 = arith.constant 0 : index
    %20 = vector.load %arg5[%c0_8, %c0_9] : memref<32x1xf32, #tpu.memory_space<vmem>>, vector<32x1xf32>
    %21 = vector.broadcast %20 : vector<32x1xf32> to vector<32x128xf32>
    %22 = arith.addf %19, %21 : vector<32x128xf32>
    %cst_10 = arith.constant 0.000000e+00 : f32
    %23 = vector.broadcast %cst_10 : f32 to vector<32x128xf32>
    %24 = arith.maximumf %22, %23 : vector<32x128xf32>
    %c0_11 = arith.constant 0 : index
    %c0_12 = arith.constant 0 : index
    %25 = vector.load %arg6[%c0_11, %c0_12] : memref<8x32xf32, #tpu.memory_space<vmem>>, vector<8x32xf32>
    %cst_13 = arith.constant dense<0.000000e+00> : vector<8x128xf32>
    %26 = tpu.matmul %25, %24, %cst_13 {dimension_numbers = #tpu.dot_dimension_numbers<[1], [0], [0], [1], [0, 0, 1, 1], [], []>} : vector<8x32xf32>, vector<32x128xf32>, vector<8x128xf32> -> vector<8x128xf32>
    %c0_14 = arith.constant 0 : index
    %c0_15 = arith.constant 0 : index
    %27 = vector.load %arg7[%c0_14, %c0_15] : memref<8x1xf32, #tpu.memory_space<vmem>>, vector<8x1xf32>
    %28 = vector.broadcast %27 : vector<8x1xf32> to vector<8x128xf32>
    %29 = arith.addf %26, %28 : vector<8x128xf32>
    %c0_16 = arith.constant 0 : index
    %c0_17 = arith.constant 0 : index
    %30 = vector.load %arg8[%c0_16, %c0_17] : memref<8x128xf32, #tpu.memory_space<vmem>>, vector<8x128xf32>
    tpu.vector_store %arg8[%c0_16, %c0_17], %29 {strides = array<i32>} : memref<8x128xf32, #tpu.memory_space<vmem>>, vector<8x128xf32>,
    return
  }
  func.func @transform_0(%arg0: i32) -> (i32, i32) {
    %c0_i32 = arith.constant 0 : i32
    %c0_i32_0 = arith.constant 0 : i32
    return %c0_i32, %arg0 : i32, i32
  }
  func.func @transform_1(%arg0: i32) -> (i32, i32) {
    %c0_i32 = arith.constant 0 : i32
    %c0_i32_0 = arith.constant 0 : i32
    %c0_i32_1 = arith.constant 0 : i32
    return %c0_i32, %c0_i32_0 : i32, i32
  }
  func.func @transform_2(%arg0: i32) -> (i32, i32) {
    %c0_i32 = arith.constant 0 : i32
    %c0_i32_0 = arith.constant 0 : i32
    %c0_i32_1 = arith.constant 0 : i32
    return %c0_i32, %c0_i32_0 : i32, i32
  }
  func.func @transform_3(%arg0: i32) -> (i32, i32) {
    %c0_i32 = arith.constant 0 : i32
    %c0_i32_0 = arith.constant 0 : i32
    %c0_i32_1 = arith.constant 0 : i32
    return %c0_i32, %c0_i32_0 : i32, i32
  }
  func.func @transform_4(%arg0: i32) -> (i32, i32) {
    %c0_i32 = arith.constant 0 : i32
    %c0_i32_0 = arith.constant 0 : i32
    %c0_i32_1 = arith.constant 0 : i32
    return %c0_i32, %c0_i32_0 : i32, i32
  }
  func.func @transform_5(%arg0: i32) -> (i32, i32) {
    %c0_i32 = arith.constant 0 : i32
    %c0_i32_0 = arith.constant 0 : i32
    %c0_i32_1 = arith.constant 0 : i32
    return %c0_i32, %c0_i32_0 : i32, i32
  }
  func.func @transform_6(%arg0: i32) -> (i32, i32) {
    %c0_i32 = arith.constant 0 : i32
    %c0_i32_0 = arith.constant 0 : i32
    %c0_i32_1 = arith.constant 0 : i32
    return %c0_i32, %c0_i32_0 : i32, i32
  }
  func.func @transform_7(%arg0: i32) -> (i32, i32) {
    %c0_i32 = arith.constant 0 : i32
    %c0_i32_0 = arith.constant 0 : i32
    return %c0_i32, %arg0 : i32, i32
  }
}

</mosaic_0001>

<bundles_post_ra>
// kernel: tpu_custom_call.1
= control target key start
LH: loop header
LB: loop body
LE: loop exit
PB: predicated region body
PF: predicated region fallthrough
CT: control target
= control target key end

     0   :  { %v384_v1 = vmov 1   ;;  %v385_v2 = vmov 0   ;;  %s491_s0 = inlined_call_operand.vmem [shape: f32[2,128], index: 0, kind: input, shape index: {}]   ;;  %s492_s1 = inlined_call_operand.vmem [shape: f32[16,2], index: 1, kind: input, shape index: {}]   ;;  %s493_s2 = inlined_call_operand.vmem [shape: f32[16,1], index: 2, kind: input, shape index: {}]   ;;  %s494_s3 = inlined_call_operand.vmem [shape: f32[32,16], index: 3, kind: input, shape index: {}]   ;;  %s495_s4 = inlined_call_operand.vmem [shape: f32[32,1], index: 4, kind: input, shape index: {}]   ;;  %s496_s5 = inlined_call_operand.vmem [shape: f32[8,32], index: 5, kind: input, shape index: {}]   ;;  %s497_s6 = inlined_call_operand.vmem [shape: f32[8,1], index: 6, kind: input, shape index: {}]   ;;  %s498_s7 = inlined_call_operand.hbm [shape: f32[8,128], index: 7, kind: output, shape index: {}]  }
   0x1   :  { %v28_v0 = vld [vmem:[%s492_s1] sm:$0xff]  ;;  %358 = vset.pattern.permute.xlu1 %v384_v1  ;;  %357 = vset.pattern.permute.xlu0 %v385_v2  ;;  %v29_v3 = vld [vmem:[%s492_s1 + $0x8] sm:$0xff] }
   0x2   :  { %47 = vperm.xlu1 %358, %v28_v0   ;;  %32 = vperm.xlu0 %357, %v28_v0  }
   0x3   :  { %12 = vsyncpa [#allocation3], 0  ;;  %v62_v4 = vld [vmem:[%s493_s2] sm:$0xff]  ;;  %v63_v5 = vld [vmem:[%s493_s2 + $0x8] sm:$0xff]  ;;  %vm106_vm0 = vcmask 130048   ;;  %v40_v12 = vlaneseq  ;;  %v386_v39 = vmov 0.0|0.0  }
   0x4   :  { %v82_v6 = vld [vmem:[%s495_s4] sm:$0xff]  ;;  %v83_v7 = vld [vmem:[%s495_s4 + $0x8] sm:$0xff]  ;;  %v84_v8 = vld [vmem:[%s495_s4 + $0x10] sm:$0xff]  ;;  %345 = vmatprep.subr.bf16.mxu1 %v386_v39  ;;  %vm387_vm1 = vmmov 0   ;;  %v388_v40 = vmov 0.0   ;;  %vm215_vm2 = vcmask 261120  }
   0x5   :  { %v85_v9 = vld [vmem:[%s495_s4 + $0x18] sm:$0xff]  ;;  %v78_v10 = vld [vmem:[%s494_s3] sm:$0xff]  ;;  %v41_v13 = vshrl.u32 %v40_v12, 7  ;;  %v79_v36 = vld [vmem:[%s494_s3 + $0x8] sm:$0xff]  ;;  %338 = vmatprep.mubr.msk.f32.mxu1 %vm387_vm1, %v388_v40  ;;  %s389_s25 = smov [#allocation2]  }
   0x6   :  { %51 = vperm.xlu1 %358, %v29_v3   ;;  %37 = vperm.xlu0 %357, %v29_v3   ;;  %v209_v11 = vld [vmem:[%s497_s6] sm:$0xff]  ;;  %v80_v37 = vld [vmem:[%s494_s3 + $0x10] sm:$0xff]  ;;  %v81_v38 = vld [vmem:[%s494_s3 + $0x18] sm:$0xff]  ;;  %s296_s26 = sshll.u32 %s389_s25, 4  ;;  %s297_s26 = int_to_ptr.vmem [resolvable:$true] %s296_s26 }
   0x7   :  { %324 = vmatprep.mubr.msk.f32.mxu0 %vm106_vm0, %v78_v10  ;;  %v56_v14 = vsub.s32 1, %v41_v13  ;;  %v42_v15 = vsub.s32 0, %v41_v13  ;;  %v27_v16 = vld [vmem:[%s491_s0] sm:$0x3]  ;;  %s360_s27 = scalar_lea.vmem %s297_s26, 128  ;;  %p365_p1 = scmp.lt.s32.totalorder %s297_s26, %s297_s26 }
   0x8   :  { %v208_v59 = vld [vmem:[%s496_s5] sm:$0xff]  ;;  %p361_p0 = scmp.ne.s32.totalorder %s297_s26, %s360_s27  ;;  %p366_p2 = scmp.lt.s32.totalorder %s360_s27, %s360_s27 }
   0x9   :  { %v57_v17 = vrot.slane %v27_v16, %v56_v14  ;;  %v43_v18 = vrot.slane %v27_v16, %v42_v15 }
   0xa   :  { %359 = vset.pattern.permute.xlu1 %v385_v2  ;;  %66 = vperm.xlu0 %357, %v62_v4   ;;  %p367_p3 = por %p366_p2, %p365_p1 }
   0xb   :  { %71 = vperm.xlu1 %359, %v63_v5  }
   0xc   :  { %p368_p4 = pnand %p367_p3, %p361_p0 }
   0xe   :  { %88 = vperm.xlu0 %357, %v82_v6  }
   0xf   :  { %93 = vperm.xlu1 %359, %v83_v7  }
  0x12   :  { %98 = vperm.xlu0 %357, %v84_v8  }
  0x13   :  { %103 = vperm.xlu1 %359, %v85_v9  }
  0x16   :  { %212 = vperm.xlu0 %357, %v209_v11  }
  0x81   :  { %v48_v19 = vpop.permute.xlu1 %47  ;;  %v33_v20 = vpop.permute.xlu0 %32 }
  0x82   :  { %v58_v21 = vmul.f32 %v57_v17, %v48_v19  ;;  %v44_v22 = vmul.f32 %v43_v18, %v33_v20 }
  0x84   :  { %v60_v27 = vadd.f32 %v58_v21, %v44_v22 }
  0x85   :  { %v52_v23 = vpop.permute.xlu1 %51  ;;  %v38_v24 = vpop.permute.xlu0 %37 }
  0x86   :  { %v59_v25 = vmul.f32 %v57_v17, %v52_v23  ;;  %v45_v26 = vmul.f32 %v43_v18, %v38_v24 }
  0x88   :  { %v61_v28 = vadd.f32 %v59_v25, %v45_v26 }
  0x89   :  { %v67_v29 = vpop.permute.xlu0 %66 }
  0x8a   :  { %v74_v30 = vadd.f32 %v67_v29, %v60_v27  ;;  %v72_v31 = vpop.permute.xlu1 %71 }
  0x8b   :  { %v75_v32 = vadd.f32 %v72_v31, %v61_v28 }
  0x8c   :  { %v76_v33 = vmax.f32 %v74_v30, 0.0 }
  0x8d   :  { %v77_v34 = vmax.f32 %v75_v32, 0.0  ;;  %v89_v42 = vpop.permute.xlu0 %88 }
  0x8e   :  { %v94_v41 = vpop.permute.xlu1 %93 }
  0x8f   :  { %v341_v35 = vpack.c.bf16 %v77_v34, %v76_v33 }
  0x91   :  { %342 = vmatprep.subr.bf16.mxu0 %v341_v35  ;;  %v99_v51 = vpop.permute.xlu0 %98 }
  0x92   :  { %344 = vmatpush3.bf16.msra.mxu0 %v341_v35  ;;  %v104_v48 = vpop.permute.xlu1 %103 }
  0x95   :  { %325 = vmatmul.mubr.msk.f32.vlgmr.msra.gmra.mrb[0].mxu0 %vm106_vm0, %v79_v36  ;;  %v213_v60 = vpop.permute.xlu0 %212 }
  0x96   :  { %327 = vmatprep.mubr.msk.f32.mxu0 %vm106_vm0, %v80_v37 }
  0x99   :  { %328 = vmatmul.mubr.msk.f32.gmra.mrb[2].mxu0 %vm106_vm0, %v81_v38 }
 0x168   :  { %v326_v43 = vpop.f32.mrb[0].mxu0 }
 0x169   :  { %v191_v44 = vadd.f32 %v326_v43, %v94_v41  ;;  %v185_v45 = vpop.f32.mrb[1].mxu0 }
 0x16a   :  { %v186_v46 = vadd.f32 %v185_v45, %v89_v42 }
 0x16b   :  { %v205_v47 = vmax.f32 %v191_v44, 0.0 }
 0x16c   :  { %v204_v49 = vmax.f32 %v186_v46, 0.0  ;;  %v329_v50 = vpop.f32.mrb[2].mxu0 }
 0x16d   :  { %v201_v52 = vadd.f32 %v329_v50, %v104_v48  ;;  %v195_v53 = vpop.f32.mrb[3].mxu0 }
 0x16e   :  { %v196_v54 = vadd.f32 %v195_v53, %v99_v51  ;;  %v346_v55 = vpack.c.bf16 %v205_v47, %v204_v49 }
 0x16f   :  { %v207_v56 = vmax.f32 %v201_v52, 0.0 }
 0x170   :  { %v206_v57 = vmax.f32 %v196_v54, 0.0  ;;  %347 = vmatpush3.bf16.msra.mxu1 %v346_v55 }
 0x171   :  { %348 = vmatprep.subr.bf16.mxu1 %v386_v39 }
 0x172   :  { %v349_v58 = vpack.c.bf16 %v207_v56, %v206_v57 }
 0x174   :  { %350 = vmatpush3.bf16.msra.mxu1 %v349_v58 }
 0x177   :  { %339 = vmatmul.mubr.msk.f32.vlgmr.msra.gmra.mrb[0].mxu1 %vm215_vm2, %v208_v59 }
 0x24a   :  { %v285_v61 = vpop.f32.mrb[0].mxu1 }
 0x24b   :  { %v286_v62 = vadd.f32 %v285_v61, %v213_v60  ;;  %v340_v63 = vpop.f32.mrb[1].mxu1 }
 0x24d   :  { %289 = vst [vmem:[#allocation2] sm:$0xff] %v286_v62 }
 0x24e   :  { %371 = shalt.err (!%p368_p4)
}
 0x24f   :  { %s372_s5 = scalar_lea.hbm %s498_s7, 128 }
 0x250   :  { %p373_p5 = scmp.ne.s32.totalorder %s498_s7, %s372_s5  ;;  %p376_p6 = scmp.lt.u32.totalorder %s372_s5, %s498_s7 }
 0x252   :  { %p378_p7 = pnand %p376_p6, %p373_p5 }
 0x254   :  { %381 = shalt.err (!%p378_p7)
}
 0x255   :  { %299 = dma.vmem_to_hbm [thread:$0]  %s297_s26, 128, %s498_s7, [#allocation3]  }
 0x256   :  { %382 = dma.done.wait [#allocation3], 128  }
 0x257   :  { %383 = vsyncadd [#allocation3], 4294967168 }
 0x258   :  { %303 = vsyncpa [#allocation3], 1 }

</bundles_post_ra>
